<compile_context>
chip_gen: v7x
topology: tpu7x:2x2x1
jax: 0.10.0
libtpu: 0.0.40
codegen_flags: <defaults>
</compile_context>

<pallas_src>
import functools
import math

import jax
import jax.numpy as jnp
from jax import lax
from jax.experimental import pallas as pl
from jax.experimental.pallas import tpu as pltpu

_SUBLANE = 8
_LANE = 128


def _pick_vmem_limit_bytes():
    """Per-generation VMEM budget (don't hard-code 32 MiB on v5e/v6e)."""
    try:
        info = pltpu.get_tpu_info()
        cap = getattr(info, "vmem_capacity_bytes", None)
        if cap:
            # ~half of physical VMEM: ~64 MiB on v5e/v6e (128 MiB phys),
            # ~32 MiB on v7x (64 MiB phys).
            return int(min(100 * 2**20, max(32 * 2**20, cap // 2)))
    except Exception:
        pass
    return 32 * 2**20


def _conv_kernel(x_ref, w_ref, b_ref, o_ref, p_ref, *,
                 KH, KW, Cin_pad, Wow, L, Nb, stride, dilation):
    # x_ref: (Nb, S2*Cin_pad, FL)   flattened stride-phase sub-images (lane-dense)
    # w_ref: (Cout, KH*KW*Cin_pad)  tap-major im2col weights (resident across steps)
    # b_ref: (Cout, 1)              f32 bias column
    # o_ref: (Nb, Cout, L)          lane-dense output (L multiple of 128 when possible)
    # p_ref: (KH*KW*Cin_pad, Nb*L)  im2col patch scratch (f32 or bf16)
    s = stride
    for nb in range(Nb):
        cols = pl.ds(nb * L, L)
        for kh in range(KH):
            rh, qh = (kh * dilation) % s, (kh * dilation) // s
            for kw in range(KW):
                rw, qw = (kw * dilation) % s, (kw * dilation) // s
                t = kh * KW + kw                       # tap index (row group)
                phase = rh * s + rw                    # which stride-phase sub-image
                start = qh * Wow + qw                  # contiguous flat offset
                tap = x_ref[nb,
                            pl.ds(phase * Cin_pad, Cin_pad),
                            pl.ds(start, L)]           # (Cin_pad, L) contiguous slice
                p_ref[pl.ds(t * Cin_pad, Cin_pad), cols] = tap.astype(p_ref.dtype)

    # One MXU matmul per grid step: (Cout, Kp) x (Kp, Nb*L), f32 accumulation.
    acc = jnp.dot(w_ref[...], p_ref[...], preferred_element_type=jnp.float32)
    acc = acc + b_ref[...]                             # single broadcast add
    for nb in range(Nb):
        o_ref[nb] = acc[:, nb * L:(nb + 1) * L].astype(o_ref.dtype)


def conv_layer_forward(x_nchw, weight_oihw, bias, *, kernel_size, stride,
                       dilation=1, use_bf16_mxu=False):
    """ConvLayer.forward: ReflectionPad2d(pad) + Conv2d(k, stride, dilation)."""
    N, C, H, W = x_nchw.shape
    Cout, Cin, KH, KW = weight_oihw.shape
    assert Cin == C and KH == kernel_size and KW == kernel_size

    pad = int(dilation * (kernel_size - 1) / 2)        # same formula as the module
    x_pad = jnp.pad(x_nchw, ((0, 0), (0, 0), (pad, pad), (pad, pad)),
                    mode="reflect")

    s, d = stride, dilation
    Hp, Wp = H + 2 * pad, W + 2 * pad
    Ho = (Hp - d * (KH - 1) - 1) // s + 1
    Wo = (Wp - d * (KW - 1) - 1) // s + 1
    qh_max = (d * (KH - 1)) // s                       # max per-tap row offset (sub-image)
    qw_max = (d * (KW - 1)) // s                       # max per-tap col offset (sub-image)

    # Lane-dense flat output: widen the output row width so Ho*Wow % 128 == 0.
    Wow0 = Wo + qw_max
    g = _LANE // math.gcd(_LANE, Ho)
    Wow = ((Wow0 + g - 1) // g) * g
    if Wow > max(Wow0 + 8, (3 * Wow0) // 2):
        # Filler cap fallback: still numerically correct (block == full array dim)
        # but output stores become masked — a perf, not correctness, concern.
        Wow = Wow0
    L = Ho * Wow
    Hsub = Ho + qh_max + 1            # +1 slack row so garbage-column reads stay in-bounds

    # Sublane-align channel groups: pad Cin to a multiple of 8 with zeros in both
    # input and weight -> every tap store is 8-row aligned and no scratch row is
    # ever uninitialized (no NaN*0 hazards).
    Cin_pad = ((Cin + _SUBLANE - 1) // _SUBLANE) * _SUBLANE

    # Phase decomposition: stride > 1 never uses strided lane slices.  Each tap
    # reads a contiguous slice of its stride-phase sub-image (all stride==1 math).
    S2 = s * s
    subs = []
    for rh in range(s):
        for rw in range(s):
            sub = x_pad[:, :, rh::s, rw::s]
            sub = sub[:, :, :min(sub.shape[2], Hsub), :min(sub.shape[3], Wow)]
            sub = jnp.pad(sub, ((0, 0), (0, 0),
                                (0, Hsub - sub.shape[2]),
                                (0, Wow - sub.shape[3])))
            subs.append(sub)
    x_ph = jnp.stack(subs, axis=1)                      # (N, S2, Cin, Hsub, Wow)
    if Cin_pad > Cin:
        x_ph = jnp.pad(x_ph, ((0, 0), (0, 0), (0, Cin_pad - Cin), (0, 0), (0, 0)))
    FL = Hsub * Wow
    x_flat = x_ph.reshape(N, S2 * Cin_pad, FL)          # contiguous reshape (free)

    # Tap-major (kh, kw, ci) im2col weight matrix (zero columns for padded channels).
    w = weight_oihw
    if Cin_pad > Cin:
        w = jnp.pad(w, ((0, 0), (0, Cin_pad - Cin), (0, 0), (0, 0)))
    Kp = KH * KW * Cin_pad
    w_mat = jnp.transpose(w, (0, 2, 3, 1)).reshape(Cout, Kp)
    scratch_dtype = jnp.float32
    if use_bf16_mxu:
        # Pre-cast weights once in the wrapper; bf16 patch scratch halves patch
        # bytes and removes the per-step (K,L)/(Cout,K) VPU casts.  Accumulation
        # stays f32 (preferred_element_type).
        w_mat = w_mat.astype(jnp.bfloat16)
        scratch_dtype = jnp.bfloat16
    bias_col = bias.reshape(Cout, 1).astype(jnp.float32)

    vmem_limit = _pick_vmem_limit_bytes()

    # Batch Nb images per grid step to amortize per-step overhead / weight push,
    # subject to a conservative VMEM budget (double-buffered in/out + scratch).
    itemsize = x_flat.dtype.itemsize
    x_bytes = S2 * Cin_pad * FL * itemsize
    o_bytes = Cout * L * jnp.dtype(x_nchw.dtype).itemsize
    p_bytes = Kp * L * jnp.dtype(scratch_dtype).itemsize
    w_bytes = Cout * Kp * jnp.dtype(w_mat.dtype).itemsize
    budget = int(0.6 * vmem_limit)
    Nb = 1
    for nb in range(1, min(N, 8) + 1):
        if N % nb:
            continue
        est = 2 * nb * (x_bytes + o_bytes) + nb * p_bytes + 2 * w_bytes
        if est <= budget:
            Nb = nb

    kernel = functools.partial(
        _conv_kernel, KH=KH, KW=KW, Cin_pad=Cin_pad, Wow=Wow, L=L,
        Nb=Nb, stride=s, dilation=d)

    flops = 2 * N * Cout * (Cin * KH * KW) * Ho * Wo
    bytes_accessed = int(x_flat.size * itemsize
                         + w_mat.size * jnp.dtype(w_mat.dtype).itemsize
                         + bias.size * 4
                         + N * Cout * L * jnp.dtype(x_nchw.dtype).itemsize)

    out_wide = pl.pallas_call(
        kernel,
        out_shape=jax.ShapeDtypeStruct((N, Cout, L), x_nchw.dtype),
        grid_spec=pltpu.PrefetchScalarGridSpec(
            num_scalar_prefetch=0,
            grid=(N // Nb,),
            in_specs=[
                pl.BlockSpec((Nb, S2 * Cin_pad, FL), lambda n: (n, 0, 0)),
                pl.BlockSpec((Cout, Kp), lambda n: (0, 0)),   # resident weights
                pl.BlockSpec((Cout, 1), lambda n: (0, 0)),    # resident bias
            ],
            out_specs=pl.BlockSpec((Nb, Cout, L), lambda n: (n, 0, 0)),
            scratch_shapes=[pltpu.VMEM((Kp, Nb * L), scratch_dtype)],
        ),
        compiler_params=pltpu.CompilerParams(
            dimension_semantics=("parallel",),
            vmem_limit_bytes=vmem_limit,
        ),
        cost_estimate=pl.CostEstimate(
            flops=flops, transcendentals=0, bytes_accessed=bytes_accessed),
    )(x_flat, w_mat, bias_col)

    # Un-flatten and drop filler columns: already NCHW (no transpose anywhere).
    out = out_wide.reshape(N, Cout, Ho, Wow)[:, :, :, :Wo]
    return out


if __name__ == "__main__":
    in_dim, out_dim, k = 4, 8, 3

    key = jax.random.PRNGKey(0)
    kx, kw_, kb = jax.random.split(key, 3)

    x = jax.random.normal(kx, (2, in_dim, 16, 16), dtype=jnp.float32)          # NCHW
    weight = 0.1 * jax.random.normal(kw_, (out_dim, in_dim, k, k), dtype=jnp.float32)
    bias = 0.1 * jax.random.normal(kb, (out_dim,), dtype=jnp.float32)

    def reference(x, w, b, ksz, s, d):
        pad = int(d * (ksz - 1) / 2)
        xp = jnp.pad(x, ((0, 0), (0, 0), (pad, pad), (pad, pad)), mode="reflect")
        return lax.conv_general_dilated(
            xp, w, window_strides=(s, s), padding="VALID",
            rhs_dilation=(d, d),
            dimension_numbers=("NCHW", "OIHW", "NCHW"),
            precision=lax.Precision.HIGHEST) + b[None, :, None, None]

    # stride=1, dilation=1 (the DuRN_S default config)
    out = conv_layer_forward(x, weight, bias, kernel_size=k, stride=1, dilation=1)
    jax.block_until_ready(out)
    ref = reference(x, weight, bias, k, 1, 1)
    assert out.shape == ref.shape
    assert jnp.allclose(out, ref, atol=1e-4, rtol=1e-4)

    # stride=2 — exercises the wrapper-side phase decomposition (no strided slices)
    out_s2 = conv_layer_forward(x, weight, bias, kernel_size=k, stride=2, dilation=1)
    jax.block_until_ready(out_s2)
    ref_s2 = reference(x, weight, bias, k, 2, 1)
    assert out_s2.shape == ref_s2.shape
    assert jnp.allclose(out_s2, ref_s2, atol=1e-4, rtol=1e-4)

    # dilation=2 — exercises dilated tap offsets
    out_d2 = conv_layer_forward(x, weight, bias, kernel_size=k, stride=1, dilation=2)
    jax.block_until_ready(out_d2)
    ref_d2 = reference(x, weight, bias, k, 1, 2)
    assert out_d2.shape == ref_d2.shape
    assert jnp.allclose(out_d2, ref_d2, atol=1e-4, rtol=1e-4)

    # Optional bf16 MXU operands (bf16 patch scratch + pre-cast weights), f32 accum.
    out_bf16 = conv_layer_forward(x, weight, bias, kernel_size=k, stride=1,
                                  dilation=1, use_bf16_mxu=True)
    jax.block_until_ready(out_bf16)
    assert jnp.allclose(out_bf16, ref, atol=5e-2, rtol=5e-2)

    print("KERNEL_OK")
</pallas_src>

<mosaic_0001>
module attributes {stable_mosaic.version = 11 : i64} {
  func.func @_conv_kernel(%arg0: i32, %arg1: memref<2x8x456xf32, #tpu.memory_space<vmem>>, %arg2: memref<8x72xf32, #tpu.memory_space<vmem>>, %arg3: memref<8x1xf32, #tpu.memory_space<vmem>>, %arg4: memref<2x8x384xf32, #tpu.memory_space<vmem>>, %arg5: memref<72x768xf32, #tpu.memory_space<vmem>>) attributes {dimension_semantics = [#tpu.dimension_semantics<parallel>], iteration_bounds = array<i64: 1>, scalar_prefetch = 0 : i64, scratch_operands = 1 : i64, tpu.core_type = #tpu.core_type<tc>, window_params = [{transform_indices = @transform_0, window_bounds = array<i64: 2, 8, 456>}, {pipeline_mode = #tpu.pipeline_mode<synchronous>, transform_indices = @transform_1, window_bounds = array<i64: 8, 72>}, {pipeline_mode = #tpu.pipeline_mode<synchronous>, transform_indices = @transform_2, window_bounds = array<i64: 8, 1>}, {transform_indices = @transform_3, window_bounds = array<i64: 2, 8, 384>}]} {
    %c0 = arith.constant 0 : index
    %c0_0 = arith.constant 0 : index
    %c0_1 = arith.constant 0 : index
    %0 = vector.load %arg1[%c0, %c0_0, %c0_1] : memref<2x8x456xf32, #tpu.memory_space<vmem>>, vector<1x8x384xf32>
    %1 = vector.shape_cast %0 : vector<1x8x384xf32> to vector<8x384xf32>
    %c0_2 = arith.constant 0 : index
    %c0_3 = arith.constant 0 : index
    %2 = vector.load %arg5[%c0_2, %c0_3] : memref<72x768xf32, #tpu.memory_space<vmem>>, vector<8x384xf32>
    tpu.vector_store %arg5[%c0_2, %c0_3], %1 {strides = array<i32>} : memref<72x768xf32, #tpu.memory_space<vmem>>, vector<8x384xf32>,
    %c0_4 = arith.constant 0 : index
    %c0_5 = arith.constant 0 : index
    %c1 = arith.constant 1 : index
    %3 = vector.load %arg1[%c0_4, %c0_5, %c1] : memref<2x8x456xf32, #tpu.memory_space<vmem>>, vector<1x8x384xf32>
    %4 = vector.shape_cast %3 : vector<1x8x384xf32> to vector<8x384xf32>
    %c8 = arith.constant 8 : index
    %c0_6 = arith.constant 0 : index
    %5 = vector.load %arg5[%c8, %c0_6] : memref<72x768xf32, #tpu.memory_space<vmem>>, vector<8x384xf32>
    tpu.vector_store %arg5[%c8, %c0_6], %4 {strides = array<i32>} : memref<72x768xf32, #tpu.memory_space<vmem>>, vector<8x384xf32>,
    %c0_7 = arith.constant 0 : index
    %c0_8 = arith.constant 0 : index
    %c2 = arith.constant 2 : index
    %6 = vector.load %arg1[%c0_7, %c0_8, %c2] : memref<2x8x456xf32, #tpu.memory_space<vmem>>, vector<1x8x384xf32>
    %7 = vector.shape_cast %6 : vector<1x8x384xf32> to vector<8x384xf32>
    %c16 = arith.constant 16 : index
    %c0_9 = arith.constant 0 : index
    %8 = vector.load %arg5[%c16, %c0_9] : memref<72x768xf32, #tpu.memory_space<vmem>>, vector<8x384xf32>
    tpu.vector_store %arg5[%c16, %c0_9], %7 {strides = array<i32>} : memref<72x768xf32, #tpu.memory_space<vmem>>, vector<8x384xf32>,
    %c0_10 = arith.constant 0 : index
    %c0_11 = arith.constant 0 : index
    %c24 = arith.constant 24 : index
    %9 = vector.load %arg1[%c0_10, %c0_11, %c24] : memref<2x8x456xf32, #tpu.memory_space<vmem>>, vector<1x8x384xf32>
    %10 = vector.shape_cast %9 : vector<1x8x384xf32> to vector<8x384xf32>
    %c24_12 = arith.constant 24 : index
    %c0_13 = arith.constant 0 : index
    %11 = vector.load %arg5[%c24_12, %c0_13] : memref<72x768xf32, #tpu.memory_space<vmem>>, vector<8x384xf32>
    tpu.vector_store %arg5[%c24_12, %c0_13], %10 {strides = array<i32>} : memref<72x768xf32, #tpu.memory_space<vmem>>, vector<8x384xf32>,
    %c0_14 = arith.constant 0 : index
    %c0_15 = arith.constant 0 : index
    %c25 = arith.constant 25 : index
    %12 = vector.load %arg1[%c0_14, %c0_15, %c25] : memref<2x8x456xf32, #tpu.memory_space<vmem>>, vector<1x8x384xf32>
    %13 = vector.shape_cast %12 : vector<1x8x384xf32> to vector<8x384xf32>
    %c32 = arith.constant 32 : index
    %c0_16 = arith.constant 0 : index
    %14 = vector.load %arg5[%c32, %c0_16] : memref<72x768xf32, #tpu.memory_space<vmem>>, vector<8x384xf32>
    tpu.vector_store %arg5[%c32, %c0_16], %13 {strides = array<i32>} : memref<72x768xf32, #tpu.memory_space<vmem>>, vector<8x384xf32>,
    %c0_17 = arith.constant 0 : index
    %c0_18 = arith.constant 0 : index
    %c26 = arith.constant 26 : index
    %15 = vector.load %arg1[%c0_17, %c0_18, %c26] : memref<2x8x456xf32, #tpu.memory_space<vmem>>, vector<1x8x384xf32>
    %16 = vector.shape_cast %15 : vector<1x8x384xf32> to vector<8x384xf32>
    %c40 = arith.constant 40 : index
    %c0_19 = arith.constant 0 : index
    %17 = vector.load %arg5[%c40, %c0_19] : memref<72x768xf32, #tpu.memory_space<vmem>>, vector<8x384xf32>
    tpu.vector_store %arg5[%c40, %c0_19], %16 {strides = array<i32>} : memref<72x768xf32, #tpu.memory_space<vmem>>, vector<8x384xf32>,
    %c0_20 = arith.constant 0 : index
    %c0_21 = arith.constant 0 : index
    %c48 = arith.constant 48 : index
    %18 = vector.load %arg1[%c0_20, %c0_21, %c48] : memref<2x8x456xf32, #tpu.memory_space<vmem>>, vector<1x8x384xf32>
    %19 = vector.shape_cast %18 : vector<1x8x384xf32> to vector<8x384xf32>
    %c48_22 = arith.constant 48 : index
    %c0_23 = arith.constant 0 : index
    %20 = vector.load %arg5[%c48_22, %c0_23] : memref<72x768xf32, #tpu.memory_space<vmem>>, vector<8x384xf32>
    tpu.vector_store %arg5[%c48_22, %c0_23], %19 {strides = array<i32>} : memref<72x768xf32, #tpu.memory_space<vmem>>, vector<8x384xf32>,
    %c0_24 = arith.constant 0 : index
    %c0_25 = arith.constant 0 : index
    %c49 = arith.constant 49 : index
    %21 = vector.load %arg1[%c0_24, %c0_25, %c49] : memref<2x8x456xf32, #tpu.memory_space<vmem>>, vector<1x8x384xf32>
    %22 = vector.shape_cast %21 : vector<1x8x384xf32> to vector<8x384xf32>
    %c56 = arith.constant 56 : index
    %c0_26 = arith.constant 0 : index
    %23 = vector.load %arg5[%c56, %c0_26] : memref<72x768xf32, #tpu.memory_space<vmem>>, vector<8x384xf32>
    tpu.vector_store %arg5[%c56, %c0_26], %22 {strides = array<i32>} : memref<72x768xf32, #tpu.memory_space<vmem>>, vector<8x384xf32>,
    %c0_27 = arith.constant 0 : index
    %c0_28 = arith.constant 0 : index
    %c50 = arith.constant 50 : index
    %24 = vector.load %arg1[%c0_27, %c0_28, %c50] : memref<2x8x456xf32, #tpu.memory_space<vmem>>, vector<1x8x384xf32>
    %25 = vector.shape_cast %24 : vector<1x8x384xf32> to vector<8x384xf32>
    %c64 = arith.constant 64 : index
    %c0_29 = arith.constant 0 : index
    %26 = vector.load %arg5[%c64, %c0_29] : memref<72x768xf32, #tpu.memory_space<vmem>>, vector<8x384xf32>
    tpu.vector_store %arg5[%c64, %c0_29], %25 {strides = array<i32>} : memref<72x768xf32, #tpu.memory_space<vmem>>, vector<8x384xf32>,
    %c1_30 = arith.constant 1 : index
    %c0_31 = arith.constant 0 : index
    %c0_32 = arith.constant 0 : index
    %27 = vector.load %arg1[%c1_30, %c0_31, %c0_32] : memref<2x8x456xf32, #tpu.memory_space<vmem>>, vector<1x8x384xf32>
    %28 = vector.shape_cast %27 : vector<1x8x384xf32> to vector<8x384xf32>
    %c0_33 = arith.constant 0 : index
    %c384 = arith.constant 384 : index
    %29 = vector.load %arg5[%c0_33, %c384] : memref<72x768xf32, #tpu.memory_space<vmem>>, vector<8x384xf32>
    tpu.vector_store %arg5[%c0_33, %c384], %28 {strides = array<i32>} : memref<72x768xf32, #tpu.memory_space<vmem>>, vector<8x384xf32>,
    %c1_34 = arith.constant 1 : index
    %c0_35 = arith.constant 0 : index
    %c1_36 = arith.constant 1 : index
    %30 = vector.load %arg1[%c1_34, %c0_35, %c1_36] : memref<2x8x456xf32, #tpu.memory_space<vmem>>, vector<1x8x384xf32>
    %31 = vector.shape_cast %30 : vector<1x8x384xf32> to vector<8x384xf32>
    %c8_37 = arith.constant 8 : index
    %c384_38 = arith.constant 384 : index
    %32 = vector.load %arg5[%c8_37, %c384_38] : memref<72x768xf32, #tpu.memory_space<vmem>>, vector<8x384xf32>
    tpu.vector_store %arg5[%c8_37, %c384_38], %31 {strides = array<i32>} : memref<72x768xf32, #tpu.memory_space<vmem>>, vector<8x384xf32>,
    %c1_39 = arith.constant 1 : index
    %c0_40 = arith.constant 0 : index
    %c2_41 = arith.constant 2 : index
    %33 = vector.load %arg1[%c1_39, %c0_40, %c2_41] : memref<2x8x456xf32, #tpu.memory_space<vmem>>, vector<1x8x384xf32>
    %34 = vector.shape_cast %33 : vector<1x8x384xf32> to vector<8x384xf32>
    %c16_42 = arith.constant 16 : index
    %c384_43 = arith.constant 384 : index
    %35 = vector.load %arg5[%c16_42, %c384_43] : memref<72x768xf32, #tpu.memory_space<vmem>>, vector<8x384xf32>
    tpu.vector_store %arg5[%c16_42, %c384_43], %34 {strides = array<i32>} : memref<72x768xf32, #tpu.memory_space<vmem>>, vector<8x384xf32>,
    %c1_44 = arith.constant 1 : index
    %c0_45 = arith.constant 0 : index
    %c24_46 = arith.constant 24 : index
    %36 = vector.load %arg1[%c1_44, %c0_45, %c24_46] : memref<2x8x456xf32, #tpu.memory_space<vmem>>, vector<1x8x384xf32>
    %37 = vector.shape_cast %36 : vector<1x8x384xf32> to vector<8x384xf32>
    %c24_47 = arith.constant 24 : index
    %c384_48 = arith.constant 384 : index
    %38 = vector.load %arg5[%c24_47, %c384_48] : memref<72x768xf32, #tpu.memory_space<vmem>>, vector<8x384xf32>
    tpu.vector_store %arg5[%c24_47, %c384_48], %37 {strides = array<i32>} : memref<72x768xf32, #tpu.memory_space<vmem>>, vector<8x384xf32>,
    %c1_49 = arith.constant 1 : index
    %c0_50 = arith.constant 0 : index
    %c25_51 = arith.constant 25 : index
    %39 = vector.load %arg1[%c1_49, %c0_50, %c25_51] : memref<2x8x456xf32, #tpu.memory_space<vmem>>, vector<1x8x384xf32>
    %40 = vector.shape_cast %39 : vector<1x8x384xf32> to vector<8x384xf32>
    %c32_52 = arith.constant 32 : index
    %c384_53 = arith.constant 384 : index
    %41 = vector.load %arg5[%c32_52, %c384_53] : memref<72x768xf32, #tpu.memory_space<vmem>>, vector<8x384xf32>
    tpu.vector_store %arg5[%c32_52, %c384_53], %40 {strides = array<i32>} : memref<72x768xf32, #tpu.memory_space<vmem>>, vector<8x384xf32>,
    %c1_54 = arith.constant 1 : index
    %c0_55 = arith.constant 0 : index
    %c26_56 = arith.constant 26 : index
    %42 = vector.load %arg1[%c1_54, %c0_55, %c26_56] : memref<2x8x456xf32, #tpu.memory_space<vmem>>, vector<1x8x384xf32>
    %43 = vector.shape_cast %42 : vector<1x8x384xf32> to vector<8x384xf32>
    %c40_57 = arith.constant 40 : index
    %c384_58 = arith.constant 384 : index
    %44 = vector.load %arg5[%c40_57, %c384_58] : memref<72x768xf32, #tpu.memory_space<vmem>>, vector<8x384xf32>
    tpu.vector_store %arg5[%c40_57, %c384_58], %43 {strides = array<i32>} : memref<72x768xf32, #tpu.memory_space<vmem>>, vector<8x384xf32>,
    %c1_59 = arith.constant 1 : index
    %c0_60 = arith.constant 0 : index
    %c48_61 = arith.constant 48 : index
    %45 = vector.load %arg1[%c1_59, %c0_60, %c48_61] : memref<2x8x456xf32, #tpu.memory_space<vmem>>, vector<1x8x384xf32>
    %46 = vector.shape_cast %45 : vector<1x8x384xf32> to vector<8x384xf32>
    %c48_62 = arith.constant 48 : index
    %c384_63 = arith.constant 384 : index
    %47 = vector.load %arg5[%c48_62, %c384_63] : memref<72x768xf32, #tpu.memory_space<vmem>>, vector<8x384xf32>
    tpu.vector_store %arg5[%c48_62, %c384_63], %46 {strides = array<i32>} : memref<72x768xf32, #tpu.memory_space<vmem>>, vector<8x384xf32>,
    %c1_64 = arith.constant 1 : index
    %c0_65 = arith.constant 0 : index
    %c49_66 = arith.constant 49 : index
    %48 = vector.load %arg1[%c1_64, %c0_65, %c49_66] : memref<2x8x456xf32, #tpu.memory_space<vmem>>, vector<1x8x384xf32>
    %49 = vector.shape_cast %48 : vector<1x8x384xf32> to vector<8x384xf32>
    %c56_67 = arith.constant 56 : index
    %c384_68 = arith.constant 384 : index
    %50 = vector.load %arg5[%c56_67, %c384_68] : memref<72x768xf32, #tpu.memory_space<vmem>>, vector<8x384xf32>
    tpu.vector_store %arg5[%c56_67, %c384_68], %49 {strides = array<i32>} : memref<72x768xf32, #tpu.memory_space<vmem>>, vector<8x384xf32>,
    %c1_69 = arith.constant 1 : index
    %c0_70 = arith.constant 0 : index
    %c50_71 = arith.constant 50 : index
    %51 = vector.load %arg1[%c1_69, %c0_70, %c50_71] : memref<2x8x456xf32, #tpu.memory_space<vmem>>, vector<1x8x384xf32>
    %52 = vector.shape_cast %51 : vector<1x8x384xf32> to vector<8x384xf32>
    %c64_72 = arith.constant 64 : index
    %c384_73 = arith.constant 384 : index
    %53 = vector.load %arg5[%c64_72, %c384_73] : memref<72x768xf32, #tpu.memory_space<vmem>>, vector<8x384xf32>
    tpu.vector_store %arg5[%c64_72, %c384_73], %52 {strides = array<i32>} : memref<72x768xf32, #tpu.memory_space<vmem>>, vector<8x384xf32>,
    %c0_74 = arith.constant 0 : index
    %c0_75 = arith.constant 0 : index
    %54 = vector.load %arg2[%c0_74, %c0_75] : memref<8x72xf32, #tpu.memory_space<vmem>>, vector<8x72xf32>
    %c0_76 = arith.constant 0 : index
    %c0_77 = arith.constant 0 : index
    %55 = vector.load %arg5[%c0_76, %c0_77] : memref<72x768xf32, #tpu.memory_space<vmem>>, vector<72x768xf32>
    %cst = arith.constant dense<0.000000e+00> : vector<8x768xf32>
    %56 = tpu.matmul %54, %55, %cst {dimension_numbers = #tpu.dot_dimension_numbers<[1], [0], [0], [1], [0, 0, 1, 1], [], []>} : vector<8x72xf32>, vector<72x768xf32>, vector<8x768xf32> -> vector<8x768xf32>
    %c0_78 = arith.constant 0 : index
    %c0_79 = arith.constant 0 : index
    %57 = vector.load %arg3[%c0_78, %c0_79] : memref<8x1xf32, #tpu.memory_space<vmem>>, vector<8x1xf32>
    %58 = vector.broadcast %57 : vector<8x1xf32> to vector<8x768xf32>
    %59 = arith.addf %56, %58 : vector<8x768xf32>
    %60 = vector.extract_strided_slice %59 {offsets = [0, 0], sizes = [8, 384], strides = [1, 1]} : vector<8x768xf32> to vector<8x384xf32>
    %c0_80 = arith.constant 0 : index
    %c0_81 = arith.constant 0 : index
    %c0_82 = arith.constant 0 : index
    %61 = vector.load %arg4[%c0_80, %c0_81, %c0_82] : memref<2x8x384xf32, #tpu.memory_space<vmem>>, vector<1x8x384xf32>
    %62 = vector.shape_cast %61 : vector<1x8x384xf32> to vector<8x384xf32>
    %63 = vector.shape_cast %60 : vector<8x384xf32> to vector<1x8x384xf32>
    tpu.vector_store %arg4[%c0_80, %c0_81, %c0_82], %63 {strides = array<i32>} : memref<2x8x384xf32, #tpu.memory_space<vmem>>, vector<1x8x384xf32>,
    %64 = vector.extract_strided_slice %59 {offsets = [0, 384], sizes = [8, 384], strides = [1, 1]} : vector<8x768xf32> to vector<8x384xf32>
    %c1_83 = arith.constant 1 : index
    %c0_84 = arith.constant 0 : index
    %c0_85 = arith.constant 0 : index
    %65 = vector.load %arg4[%c1_83, %c0_84, %c0_85] : memref<2x8x384xf32, #tpu.memory_space<vmem>>, vector<1x8x384xf32>
    %66 = vector.shape_cast %65 : vector<1x8x384xf32> to vector<8x384xf32>
    %67 = vector.shape_cast %64 : vector<8x384xf32> to vector<1x8x384xf32>
    tpu.vector_store %arg4[%c1_83, %c0_84, %c0_85], %67 {strides = array<i32>} : memref<2x8x384xf32, #tpu.memory_space<vmem>>, vector<1x8x384xf32>,
    return
  }
  func.func @transform_0(%arg0: i32) -> (i32, i32, i32) {
    %c0_i32 = arith.constant 0 : i32
    %c0_i32_0 = arith.constant 0 : i32
    %c0_i32_1 = arith.constant 0 : i32
    return %arg0, %c0_i32, %c0_i32_0 : i32, i32, i32
  }
  func.func @transform_1(%arg0: i32) -> (i32, i32) {
    %c0_i32 = arith.constant 0 : i32
    %c0_i32_0 = arith.constant 0 : i32
    %c0_i32_1 = arith.constant 0 : i32
    return %c0_i32, %c0_i32_0 : i32, i32
  }
  func.func @transform_2(%arg0: i32) -> (i32, i32) {
    %c0_i32 = arith.constant 0 : i32
    %c0_i32_0 = arith.constant 0 : i32
    %c0_i32_1 = arith.constant 0 : i32
    return %c0_i32, %c0_i32_0 : i32, i32
  }
  func.func @transform_3(%arg0: i32) -> (i32, i32, i32) {
    %c0_i32 = arith.constant 0 : i32
    %c0_i32_0 = arith.constant 0 : i32
    %c0_i32_1 = arith.constant 0 : i32
    return %arg0, %c0_i32, %c0_i32_0 : i32, i32, i32
  }
}

</mosaic_0001>

<bundles_post_ra>
// kernel: tpu_custom_call.1
= control target key start
LH: loop header
LB: loop body
LE: loop exit
PB: predicated region body
PF: predicated region fallthrough
CT: control target
= control target key end

     0   :  { %8 = vsyncpa [#allocation4], 0  ;;  %s1284_s0 = inlined_call_operand.hbm [shape: f32[2,8,456], index: 0, kind: input, shape index: {}]   ;;  %s1285_s1 = inlined_call_operand.vmem [shape: f32[8,72], index: 1, kind: input, shape index: {}]   ;;  %s1286_s2 = inlined_call_operand.vmem [shape: f32[8,1], index: 2, kind: input, shape index: {}]   ;;  %s1287_s3 = inlined_call_operand.hbm [shape: f32[2,8,384], index: 3, kind: output, shape index: {}]  }
   0x1   :  { %9 = vsyncpa [#allocation5], 0  ;;  %s1004_s12 = smov [#allocation3]   ;;  %s956_s16 = scalar_lea.hbm %s1284_s0, 1024 }
   0x2   :  { %s15_s13 = sshll.u32 %s1004_s12, 4  ;;  %p957_p0 = scmp.ne.s32.totalorder %s1284_s0, %s956_s16  ;;  %s16_s13 = int_to_ptr.vmem [resolvable:$true] %s15_s13 }
   0x3   :  { %p960_p1 = scmp.lt.u32.totalorder %s956_s16, %s1284_s0 }
   0x5   :  { %p962_p2 = pnand %p960_p1, %p957_p0 }
   0x7   :  { %965 = shalt.err (!%p962_p2)
}
   0x8   :  { %s966_s21 = scalar_lea.vmem %s16_s13, 1024  ;;  %p971_p4 = scmp.lt.s32.totalorder %s16_s13, %s16_s13 }
   0x9   :  { %p967_p3 = scmp.ne.s32.totalorder %s16_s13, %s966_s21  ;;  %p972_p5 = scmp.lt.s32.totalorder %s966_s21, %s966_s21 }
   0xb   :  { %p973_p6 = por %p972_p5, %p971_p4 }
   0xd   :  { %p974_p7 = pnand %p973_p6, %p967_p3 }
   0xf   :  { %977 = shalt.err (!%p974_p7)
}
  0x10   :  { %s1005_s22 = smov 512   ;;  %s1006_s23 = smov 32  }
  0x11   :  { %21 = dma.hbm_to_vmem [thread:$0]  %s1284_s0, 1024, %s16_s13, [#allocation4], %s1005_s22, %s1005_s22, %s1006_s23  }
  0x12   :  { %1000 = dma.done.wait [#allocation4], 1024  }
  0x13   :  { %1001 = vsyncadd [#allocation4], 4294966272  ;;  %v1052_v0 = vld [vmem:[#allocation3 + $0x8] sm:$0xff]  ;;  %v1054_v1 = vld [vmem:[#allocation3 + $0x10] sm:$0xff]  ;;  %s1007_s26 = smov 126   ;;  %s1008_s27 = smov 127  }
  0x14   :  { %v1056_v2 = vld [vmem:[#allocation3] sm:$0xff]  ;;  %v829_v3 = vpack.i.bf16 %v1054_v1, %v1052_v0  ;;  %s1009_s0 = smov 104   ;;  %s1010_s28 = smov 102   ;;  %v38_v6 = vld [vmem:[#allocation3 + $0x18] sm:$0xff]  ;;  %v1079_v8 = vld [vmem:[#allocation3 + $0x28] sm:$0xff]  ;;  %v1014_v10 = vmov 0.0  }
  0x15   :  { %v1060_v4 = vld [vmem:[#allocation3 + $0x20] sm:$0xff]  ;;  %s1011_s29 = smov 103   ;;  %s1012_s30 = smov 79   ;;  %v253_v7 = vld [vmem:[#allocation3 + $0x38] sm:$0xff]  ;;  %v1081_v9 = vld [vmem:[#allocation3 + $0x30] sm:$0xff]  ;;  %579 = vmatprep.mubr.f32.mxu0 %v1014_v10  ;;  %650 = vmatprep.mubr.f32.mxu1 %v1014_v10  ;;  %v1016_v15 = vmov 0  }
  0x16   :  { %830 = vrot.lane.b32.xlu1 %v829_v3, %s1007_s26  ;;  %820 = vrot.lane.b32.xlu0 %v829_v3, %s1008_s27  ;;  %v824_v5 = vpack.i.bf16 %v1060_v4, %v1056_v2  ;;  %s1013_s4 = smov 80   ;;  %s1015_s5 = smov 78   ;;  %v889_v11 = vpack.i.bf16 %v38_v6, %v253_v7  ;;  %v884_v12 = vpack.i.bf16 %v1081_v9, %v1079_v8  ;;  %v505_v16 = vld [vmem:[%s1286_s2] sm:$0xff]  ;;  %vm51_vm0 = vcmask 1039360  }
  0x17   :  { %v944_v13 = vpack.i.bf16 %v1079_v8, %v1060_v4  ;;  %v949_v14 = vpack.i.bf16 %v253_v7, %v1081_v9  ;;  %954 = vset.pattern.permute.xlu1 %v1016_v15  ;;  %955 = vset.pattern.permute.xlu0 %v1016_v15  ;;  %vm77_vm1 = vcmask 1031168   ;;  %vm103_vm2 = vcmask 850944  }
  0x18   :  { %vm129_vm3 = vcmask 842752   ;;  %vm155_vm4 = vcmask 834560   ;;  %vm207_vm5 = vcmask 646144   ;;  %vm181_vm6 = vcmask 654336  }
  0x19   :  { %vm233_vm7 = vcmask 637952   ;;  %vm511_vm8 = vcmask 588800  }
  0x1a   :  { %835 = vrot.lane.b32.xlu1 %v829_v3, %s1009_s0  ;;  %825 = vrot.lane.b32.xlu0 %v824_v5, %s1008_s27 }
  0x1e   :  { %845 = vrot.lane.b32.xlu1 %v824_v5, %s1009_s0  ;;  %840 = vrot.lane.b32.xlu0 %v824_v5, %s1007_s26 }
  0x22   :  { %855 = vrot.lane.b32.xlu1 %v829_v3, %s1010_s28  ;;  %850 = vrot.lane.b32.xlu0 %v829_v3, %s1011_s29 }
  0x26   :  { %865 = vrot.lane.b32.xlu1 %v824_v5, %s1010_s28  ;;  %860 = vrot.lane.b32.xlu0 %v824_v5, %s1011_s29 }
  0x2a   :  { %875 = vrot.lane.b32.xlu1 %v829_v3, %s1012_s30  ;;  %870 = vrot.lane.b32.xlu0 %v829_v3, %s1013_s4 }
  0x2e   :  { %199 = vrot.lane.b32.xlu1 %v1056_v2, %s1012_s30  ;;  %880 = vrot.lane.b32.xlu0 %v824_v5, %s1013_s4 }
  0x32   :  { %229 = vrot.lane.b32.xlu1 %v1054_v1, %s1015_s5  ;;  %227 = vrot.lane.b32.xlu0 %v1052_v0, %s1015_s5 }
  0x36   :  { %890 = vrot.lane.b32.xlu1 %v889_v11, %s1008_s27  ;;  %885 = vrot.lane.b32.xlu0 %v884_v12, %s1008_s27 }
  0x3a   :  { %895 = vrot.lane.b32.xlu1 %v884_v12, %s1007_s26  ;;  %225 = vrot.lane.b32.xlu0 %v1056_v2, %s1015_s5 }
  0x3e   :  { %905 = vrot.lane.b32.xlu1 %v884_v12, %s1009_s0  ;;  %900 = vrot.lane.b32.xlu0 %v889_v11, %s1007_s26 }
  0x42   :  { %915 = vrot.lane.b32.xlu1 %v884_v12, %s1011_s29  ;;  %910 = vrot.lane.b32.xlu0 %v889_v11, %s1009_s0 }
  0x46   :  { %925 = vrot.lane.b32.xlu1 %v884_v12, %s1010_s28  ;;  %920 = vrot.lane.b32.xlu0 %v889_v11, %s1011_s29 }
  0x4a   :  { %935 = vrot.lane.b32.xlu1 %v884_v12, %s1013_s4  ;;  %930 = vrot.lane.b32.xlu0 %v889_v11, %s1010_s28 }
  0x4e   :  { %945 = vrot.lane.b32.xlu1 %v944_v13, %s1012_s30  ;;  %940 = vrot.lane.b32.xlu0 %v889_v11, %s1013_s4 }
  0x52   :  { %205 = vrot.lane.b32.xlu1 %v38_v6, %s1012_s30  ;;  %950 = vrot.lane.b32.xlu0 %v949_v14, %s1012_s30 }
  0x56   :  { %435 = vrot.lane.b32.xlu1 %v1079_v8, %s1015_s5  ;;  %433 = vrot.lane.b32.xlu0 %v1060_v4, %s1015_s5 }
  0x5a   :  { %439 = vrot.lane.b32.xlu1 %v253_v7, %s1015_s5  ;;  %437 = vrot.lane.b32.xlu0 %v1081_v9, %s1015_s5 }
  0x5e   :  { %231 = vrot.lane.b32.xlu0 %v38_v6, %s1015_s5  ;;  %508 = vperm.xlu1 %954, %v505_v16  }
  0x88   :  { %v1122_v17 = vpop.permute.xlu1 %830  ;;  %v1124_v18 = vpop.permute.xlu0 %820 }
  0x89   :  { %v833_v19 = vunpack.i.h.bf16 %v1122_v17  ;;  %v832_v20 = vunpack.i.l.bf16 %v1122_v17  ;;  %v823_v21 = vunpack.i.h.bf16 %v1124_v18  ;;  %v822_v22 = vunpack.i.l.bf16 %v1124_v18  ;;  %v1216_v18 = vld [vmem:[%s1285_s1] sm:$0xff]  ;;  %s1017_s1 = smov [#allocation6]  }
  0x8a   :  { %s740_s9 = sshll.u32 %s1017_s1, 4  ;;  %s741_s9 = int_to_ptr.vmem [resolvable:$true] %s740_s9 }
  0x8b   :  { %v53_v23 = vsel %vm51_vm0, %v822_v22, %v823_v21  ;;  %v79_v30 = vsel %vm77_vm1, %v832_v20, %v833_v19  ;;  %s978_s10 = scalar_lea.vmem %s741_s9, 768  ;;  %p983_p9 = scmp.lt.s32.totalorder %s741_s9, %s741_s9 }
  0x8c   :  { %v1133_v24 = vpop.permute.xlu1 %835  ;;  %v1135_v25 = vpop.permute.xlu0 %825  ;;  %v755_v26 = vpack.c.bf16 %v53_v23, %v1052_v0  ;;  %p979_p8 = scmp.ne.s32.totalorder %s741_s9, %s978_s10  ;;  %p984_p10 = scmp.lt.s32.totalorder %s978_s10, %s978_s10 }
  0x8d   :  { %v838_v27 = vunpack.i.h.bf16 %v1133_v24  ;;  %v837_v28 = vunpack.i.l.bf16 %v1133_v24  ;;  %v827_v29 = vunpack.i.l.bf16 %v1135_v25 }
  0x8e   :  { %756 = vmatprep.subr.bf16.mxu0 %v755_v26  ;;  %p985_p11 = por %p984_p10, %p983_p9 }
  0x8f   :  { %v52_v31 = vsel %vm51_vm0, %v827_v29, %v822_v22  ;;  %v105_v32 = vsel %vm103_vm2, %v837_v28, %v838_v27 }
  0x90   :  { %v1148_v33 = vpop.permute.xlu1 %845  ;;  %v1150_v34 = vpop.permute.xlu0 %840  ;;  %v757_v35 = vpack.c.bf16 %v52_v31, %v1056_v2  ;;  %v759_v36 = vpack.c.bf16 %v105_v32, %v79_v30  ;;  %p986_p12 = pnand %p985_p11, %p979_p8 }
  0x91   :  { %v847_v37 = vunpack.i.l.bf16 %v1148_v33  ;;  %v842_v38 = vunpack.i.l.bf16 %v1150_v34 }
  0x92   :  { %758 = vmatpush1.bf16.msra.mxu0 %v757_v35 }
  0x93   :  { %760 = vmatprep.subr.bf16.mxu0 %v759_v36  ;;  %v78_v39 = vsel %vm77_vm1, %v842_v38, %v832_v20  ;;  %v104_v40 = vsel %vm103_vm2, %v847_v37, %v837_v28  ;;  %v828_v20 = vunpack.i.h.bf16 %v1135_v25 }
  0x94   :  { %v1157_v41 = vpop.permute.xlu1 %855  ;;  %v1159_v42 = vpop.permute.xlu0 %850  ;;  %v761_v43 = vpack.c.bf16 %v104_v40, %v78_v39 }
  0x95   :  { %v858_v44 = vunpack.i.h.bf16 %v1157_v41  ;;  %v857_v45 = vunpack.i.l.bf16 %v1157_v41  ;;  %v853_v46 = vunpack.i.h.bf16 %v1159_v42  ;;  %v852_v47 = vunpack.i.l.bf16 %v1159_v42 }
  0x96   :  { %762 = vmatpush1.bf16.msra.mxu0 %v761_v43 }
  0x97   :  { %v131_v48 = vsel %vm129_vm3, %v852_v47, %v853_v46  ;;  %v157_v49 = vsel %vm155_vm4, %v857_v45, %v858_v44 }
  0x98   :  { %v1171_v50 = vpop.permute.xlu1 %865  ;;  %v1173_v51 = vpop.permute.xlu0 %860  ;;  %v763_v52 = vpack.c.bf16 %v157_v49, %v131_v48 }
  0x99   :  { %v867_v53 = vunpack.i.l.bf16 %v1171_v50  ;;  %v862_v54 = vunpack.i.l.bf16 %v1173_v51 }
  0x9a   :  { %764 = vmatprep.subr.bf16.mxu0 %v763_v52 }
  0x9b   :  { %v130_v55 = vsel %vm129_vm3, %v862_v54, %v852_v47  ;;  %v156_v56 = vsel %vm155_vm4, %v867_v53, %v857_v45 }
  0x9c   :  { %v1179_v57 = vpop.permute.xlu1 %875  ;;  %v1181_v58 = vpop.permute.xlu0 %870  ;;  %v765_v59 = vpack.c.bf16 %v156_v56, %v130_v55 }
  0x9d   :  { %v878_v60 = vunpack.i.h.bf16 %v1179_v57  ;;  %v877_v61 = vunpack.i.l.bf16 %v1179_v57  ;;  %v873_v62 = vunpack.i.h.bf16 %v1181_v58  ;;  %v872_v63 = vunpack.i.l.bf16 %v1181_v58 }
  0x9e   :  { %766 = vmatpush1.bf16.msra.mxu0 %v765_v59 }
  0x9f   :  { %v183_v0 = vsel %vm181_vm6, %v872_v63, %v873_v62  ;;  %v209_v2 = vsel %vm207_vm5, %v877_v61, %v878_v60 }
  0xa0   :  { %v200_v3 = vpop.permute.xlu1 %199  ;;  %v1193_v5 = vpop.permute.xlu0 %880  ;;  %v767_v6 = vpack.c.bf16 %v209_v2, %v183_v0 }
  0xa1   :  { %v208_v7 = vsel %vm207_vm5, %v200_v3, %v877_v61  ;;  %v882_v11 = vunpack.i.l.bf16 %v1193_v5 }
  0xa2   :  { %768 = vmatprep.subr.bf16.mxu0 %v767_v6 }
  0xa3   :  { %v182_v12 = vsel %vm181_vm6, %v882_v11, %v872_v63 }
  0xa4   :  { %v1198_v13 = vpop.permute.xlu1 %229  ;;  %v228_v14 = vpop.permute.xlu0 %227  ;;  %v769_v15 = vpack.c.bf16 %v208_v7, %v182_v12 }
  0xa5   :  { %v235_v16 = vsel %vm233_vm7, %v228_v14, %v1198_v13 }
  0xa6   :  { %770 = vmatpush1.bf16.msra.mxu0 %v769_v15 }
  0xa7   :  { %531 = vmatprep.subr.mxu0 %v235_v16  ;;  %v868_v16 = vunpack.i.h.bf16 %v1171_v50 }
  0xa8   :  { %v891_v22 = vpop.permute.xlu1 %890  ;;  %v886_v23 = vpop.permute.xlu0 %885 }
  0xa9   :  { %v893_v26 = vunpack.i.h.bf16 %v891_v22  ;;  %v892_v28 = vunpack.i.l.bf16 %v891_v22  ;;  %v888_v29 = vunpack.i.h.bf16 %v886_v23  ;;  %v887_v30 = vunpack.i.l.bf16 %v886_v23 }
  0xab   :  { %v266_v31 = vsel %vm51_vm0, %v828_v20, %v887_v30  ;;  %v54_v32 = vsel %vm51_vm0, %v823_v21, %v893_v26  ;;  %v268_v35 = vsel %vm51_vm0, %v888_v29, %v892_v28  ;;  %v267_v36 = vsel %vm51_vm0, %v887_v30, %v888_v29 }
  0xac   :  { %v896_v37 = vpop.permute.xlu1 %895  ;;  %v226_v38 = vpop.permute.xlu0 %225  ;;  %v771_v25 = vpack.c.bf16 %v266_v31, %v1060_v4  ;;  %v773_v39 = vpack.c.bf16 %v54_v32, %v1054_v1  ;;  %v787_v40 = vpack.c.bf16 %v268_v35, %v1081_v9  ;;  %v789_v21 = vpack.c.bf16 %v267_v36, %v1079_v8 }
  0xad   :  { %v234_v43 = vsel %vm233_vm7, %v226_v38, %v228_v14  ;;  %v897_v45 = vunpack.i.l.bf16 %v896_v37  ;;  %v848_v1 = vunpack.i.h.bf16 %v1148_v33  ;;  %v843_v9 = vunpack.i.h.bf16 %v1150_v34 }
  0xae   :  { %532 = vmatpush1.msra.mxu0 %v234_v43  ;;  %772 = vmatprep.subr.bf16.mxu1 %v771_v25  ;;  %v898_v49 = vunpack.i.h.bf16 %v896_v37  ;;  %v863_v20 = vunpack.i.h.bf16 %v1173_v51 }
  0xaf   :  { %774 = vmatpush1.bf16.msra.mxu1 %v773_v39  ;;  %788 = vmatprep.subr.bf16.mxu0 %v787_v40  ;;  %v291_v54 = vsel %vm77_vm1, %v843_v9, %v897_v45  ;;  %v883_v40 = vunpack.i.h.bf16 %v1193_v5 }
  0xb0   :  { %v906_v4 = vpop.permute.xlu1 %905  ;;  %v901_v47 = vpop.permute.xlu0 %900  ;;  %752 = vmatmul.mubr.msk.f32.vlgmr.msra.gmra.mrb[0].mxu0 %vm511_vm8, %v1216_v18  ;;  %v292_v33 = vsel %vm77_vm1, %v897_v45, %v898_v49 }
  0xb1   :  { %v907_v48 = vunpack.i.l.bf16 %v906_v4  ;;  %790 = vmatpush1.bf16.msra.mxu0 %v789_v21  ;;  %721 = vmatprep.mubr.f32.mxu0 %v1014_v10  ;;  %v908_v52 = vunpack.i.h.bf16 %v906_v4  ;;  %v903_v53 = vunpack.i.h.bf16 %v901_v47  ;;  %v902_v8 = vunpack.i.l.bf16 %v901_v47 }
  0xb3   :  { %v316_v55 = vsel %vm103_vm2, %v848_v1, %v907_v48  ;;  %v317_v34 = vsel %vm103_vm2, %v907_v48, %v908_v52  ;;  %v80_v10 = vsel %vm77_vm1, %v833_v19, %v903_v53  ;;  %v293_v6 = vsel %vm77_vm1, %v898_v49, %v902_v8 }
  0xb4   :  { %v916_v56 = vpop.permute.xlu1 %915  ;;  %v911_v59 = vpop.permute.xlu0 %910  ;;  %v775_v61 = vpack.c.bf16 %v316_v55, %v291_v54  ;;  %v793_v17 = vpack.c.bf16 %v317_v34, %v292_v33 }
  0xb5   :  { %v913_v63 = vunpack.i.h.bf16 %v911_v59  ;;  %v912_v0 = vunpack.i.l.bf16 %v911_v59  ;;  %v917_v2 = vunpack.i.l.bf16 %v916_v56  ;;  %v918_v19 = vunpack.i.h.bf16 %v916_v56 }
  0xb6   :  { %776 = vmatprep.subr.bf16.mxu1 %v775_v61 }
  0xb7   :  { %v106_v3 = vsel %vm103_vm2, %v838_v27, %v913_v63  ;;  %v318_v7 = vsel %vm103_vm2, %v908_v52, %v912_v0  ;;  %v341_v27 = vsel %vm129_vm3, %v863_v20, %v917_v2  ;;  %v342_v51 = vsel %vm129_vm3, %v917_v2, %v918_v19 }
  0xb8   :  { %v926_v11 = vpop.permute.xlu1 %925  ;;  %v921_v12 = vpop.permute.xlu0 %920  ;;  %v777_v14 = vpack.c.bf16 %v106_v3, %v80_v10  ;;  %v791_v15 = vpack.c.bf16 %v318_v7, %v293_v6 }
  0xb9   :  { %v927_v22 = vunpack.i.l.bf16 %v926_v11  ;;  %v928_v23 = vunpack.i.h.bf16 %v926_v11  ;;  %v923_v26 = vunpack.i.h.bf16 %v921_v12  ;;  %v922_v24 = vunpack.i.l.bf16 %v921_v12 }
  0xba   :  { %778 = vmatpush1.bf16.msra.mxu1 %v777_v14  ;;  %792 = vmatprep.subr.bf16.mxu0 %v791_v15 }
  0xbb   :  { %794 = vmatpush1.bf16.msra.mxu0 %v793_v17  ;;  %v366_v28 = vsel %vm155_vm4, %v868_v16, %v927_v22  ;;  %v367_v35 = vsel %vm155_vm4, %v927_v22, %v928_v23  ;;  %v132_v36 = vsel %vm129_vm3, %v853_v46, %v923_v26  ;;  %v343_v25 = vsel %vm129_vm3, %v918_v19, %v922_v24 }
  0xbc   :  { %v936_v29 = vpop.permute.xlu1 %935  ;;  %v931_v30 = vpop.permute.xlu0 %930  ;;  %v779_v31 = vpack.c.bf16 %v366_v28, %v341_v27  ;;  %v797_v47 = vpack.c.bf16 %v367_v35, %v342_v51 }
  0xbd   :  { %v933_v32 = vunpack.i.h.bf16 %v931_v30  ;;  %v932_v50 = vunpack.i.l.bf16 %v931_v30  ;;  %v937_v37 = vunpack.i.l.bf16 %v936_v29  ;;  %v938_v46 = vunpack.i.h.bf16 %v936_v29 }
  0xbe   :  { %780 = vmatprep.subr.bf16.mxu1 %v779_v31 }
  0xbf   :  { %v158_v38 = vsel %vm155_vm4, %v858_v44, %v933_v32  ;;  %v368_v39 = vsel %vm155_vm4, %v928_v23, %v932_v50  ;;  %v391_v44 = vsel %vm181_vm6, %v883_v40, %v937_v37  ;;  %v392_v59 = vsel %vm181_vm6, %v937_v37, %v938_v46 }
  0xc0   :  { %v946_v43 = vpop.permute.xlu1 %945  ;;  %v941_v21 = vpop.permute.xlu0 %940  ;;  %v781_v45 = vpack.c.bf16 %v158_v38, %v132_v36  ;;  %v795_v4 = vpack.c.bf16 %v368_v39, %v343_v25 }
  0xc1   :  { %v948_v1 = vunpack.i.h.bf16 %v946_v43  ;;  %v947_v42 = vunpack.i.l.bf16 %v946_v43  ;;  %v943_v9 = vunpack.i.h.bf16 %v941_v21  ;;  %v942_v41 = vunpack.i.l.bf16 %v941_v21 }
  0xc2   :  { %782 = vmatpush1.bf16.msra.mxu1 %v781_v45  ;;  %796 = vmatprep.subr.bf16.mxu0 %v795_v4 }
  0xc3   :  { %798 = vmatpush1.bf16.msra.mxu0 %v797_v47  ;;  %v416_v48 = vsel %vm207_vm5, %v947_v42, %v948_v1  ;;  %v184_v53 = vsel %vm181_vm6, %v873_v62, %v943_v9  ;;  %v393_v63 = vsel %vm181_vm6, %v938_v46, %v942_v41 }
  0xc4   :  { %v206_v49 = vpop.permute.xlu1 %205  ;;  %v951_v52 = vpop.permute.xlu0 %950  ;;  %v783_v5 = vpack.c.bf16 %v416_v48, %v391_v44 }
  0xc5   :  { %v210_v8 = vsel %vm207_vm5, %v878_v60, %v206_v49  ;;  %v953_v54 = vunpack.i.h.bf16 %v951_v52  ;;  %v952_v55 = vunpack.i.l.bf16 %v951_v52 }
  0xc6   :  { %v785_v56 = vpack.c.bf16 %v210_v8, %v184_v53  ;;  %784 = vmatprep.subr.bf16.mxu1 %v783_v5 }
  0xc7   :  { %v417_v61 = vsel %vm207_vm5, %v948_v1, %v952_v55  ;;  %v418_v0 = vsel %vm207_vm5, %v952_v55, %v953_v54 }
  0xc8   :  { %v801_v33 = vpack.c.bf16 %v417_v61, %v392_v59  ;;  %v436_v58 = vpop.permute.xlu1 %435  ;;  %v434_v34 = vpop.permute.xlu0 %433  ;;  %786 = vmatpush1.bf16.msra.mxu1 %v785_v56  ;;  %v799_v62 = vpack.c.bf16 %v418_v0, %v393_v63 }
  0xc9   :  { %v441_v57 = vsel %vm233_vm7, %v434_v34, %v436_v58 }
  0xca   :  { %602 = vmatprep.subr.mxu1 %v441_v57  ;;  %800 = vmatprep.subr.bf16.mxu0 %v799_v62 }
  0xcb   :  { %802 = vmatpush1.bf16.msra.mxu0 %v801_v33 }
  0xcc   :  { %v440_v60 = vpop.permute.xlu1 %439  ;;  %v438_v10 = vpop.permute.xlu0 %437 }
  0xcd   :  { %v442_v2 = vsel %vm233_vm7, %v436_v58, %v438_v10  ;;  %v443_v3 = vsel %vm233_vm7, %v438_v10, %v440_v60 }
  0xce   :  { %673 = vmatprep.subr.mxu0 %v443_v3 }
  0xcf   :  { %674 = vmatpush1.msra.mxu0 %v442_v2 }
  0xd0   :  { %v232_v6 = vpop.permute.xlu0 %231  ;;  %754 = vmatmul.mubr.msk.f32.vlgmr.msra.gmra.mrb[2].mxu0 %vm511_vm8, %v1216_v18 }
  0xd1   :  { %v236_v7 = vsel %vm233_vm7, %v1198_v13, %v232_v6 }
  0xd2   :  { %603 = vmatpush1.msra.mxu1 %v236_v7 }
  0xd3   :  { %753 = vmatmul.mubr.msk.f32.vlgmr.msra.gmra.mrb[0].mxu1 %vm511_vm8, %v1216_v18 }
  0xdd   :  { %v509_v11 = vpop.permute.xlu1 %508 }
 0x183   :  { %v581_v12 = vpop.f32.mrb[0].mxu0 }
 0x184   :  { %v582_v14 = vadd.f32 %v581_v12, %v509_v11  ;;  %v583_v15 = vpop.f32.mrb[1].mxu0 }
 0x185   :  { %v584_v16 = vadd.f32 %v583_v15, %v509_v11 }
 0x186   :  { %728 = vst [vmem:[#allocation6] sm:$0xff] %v582_v14 }
 0x187   :  { %729 = vst [vmem:[#allocation6 + $0x8] sm:$0xff] %v584_v16 }
 0x1a3   :  { %v723_v20 = vpop.f32.mrb[2].mxu0 }
 0x1a4   :  { %v724_v17 = vadd.f32 %v723_v20, %v509_v11  ;;  %v725_v22 = vpop.f32.mrb[3].mxu0 }
 0x1a5   :  { %v726_v19 = vadd.f32 %v725_v22, %v509_v11 }
 0x1a6   :  { %733 = vst [vmem:[#allocation6 + $0x20] sm:$0xff] %v724_v17  ;;  %v652_v23 = vpop.f32.mrb[0].mxu1 }
 0x1a7   :  { %v653_v13 = vadd.f32 %v652_v23, %v509_v11  ;;  %734 = vst [vmem:[#allocation6 + $0x28] sm:$0xff] %v726_v19  ;;  %v654_v26 = vpop.f32.mrb[1].mxu1 }
 0x1a8   :  { %v655_v24 = vadd.f32 %v654_v26, %v509_v11 }
 0x1a9   :  { %730 = vst [vmem:[#allocation6 + $0x10] sm:$0xff] %v653_v13 }
 0x1aa   :  { %732 = vst [vmem:[#allocation6 + $0x18] sm:$0xff] %v655_v24 }
 0x1ab   :  { %989 = shalt.err (!%p986_p12)
}
 0x1ac   :  { %s990_s13 = scalar_lea.hbm %s1287_s3, 768 }
 0x1ad   :  { %p991_p13 = scmp.ne.s32.totalorder %s1287_s3, %s990_s13  ;;  %p994_p0 = scmp.lt.u32.totalorder %s990_s13, %s1287_s3 }
 0x1af   :  { %p996_p1 = pnand %p994_p0, %p991_p13 }
 0x1b1   :  { %999 = shalt.err (!%p996_p1)
}
 0x1b2   :  { %s1018_s18 = smov 384   ;;  %s1019_s19 = smov 24  }
 0x1b3   :  { %746 = dma.vmem_to_hbm [thread:$0]  %s741_s9, 768, %s1287_s3, [#allocation5], %s1018_s18, %s1018_s18, %s1019_s19  }
 0x1b4   :  { %1002 = dma.done.wait [#allocation5], 768  }
 0x1b5   :  { %1003 = vsyncadd [#allocation5], 4294966528 }
 0x1b6   :  { %750 = vsyncpa [#allocation4], 1 }
 0x1b7   :  { %751 = vsyncpa [#allocation5], 1 }

</bundles_post_ra>
